<compile_context>
chip_gen: v6e
topology: v6e:2x2x1
jax: 0.10.0
libtpu: 0.0.40
codegen_flags: <defaults>
</compile_context>

<pallas_src>
import functools

import jax
import jax.numpy as jnp
from jax.experimental import pallas as pl
from jax.experimental.pallas import tpu as pltpu


def _round_up(x: int, m: int) -> int:
    return ((x + m - 1) // m) * m


def _cdiv(a: int, b: int) -> int:
    return (a + b - 1) // b


def _largest_tile(dim_p: int, want: int, unit: int = 128) -> int:
    """Largest multiple of `unit` that divides dim_p and is <= want.
    Requires dim_p % unit == 0 (guaranteed by the 128-padding)."""
    t = min(want, dim_p)
    t = max(unit, (t // unit) * unit)
    while dim_p % t:
        t -= unit
    return t


def _device_vmem_limit() -> int:
    """Per-generation scoped-VMEM limit (bytes)."""
    try:
        kind = jax.devices()[0].device_kind.lower()
    except Exception:  # pragma: no cover
        kind = ""
    if "v7" in kind:
        return 56 * 1024 * 1024      # v7x: 64 MiB physical per TC
    if "v5" in kind or "v6" in kind:
        return 100 * 1024 * 1024     # v5e / v6e: 128 MiB physical
    return 56 * 1024 * 1024          # conservative fallback


def _pick_tiles(M, in_p, mid_p, out_p, x_bytes, w_bytes, o_bytes,
                tm_req, tk_req, tn_req, budget_bytes):
    """Choose (tm, tk, tn) honoring divisibility, dtype-native sublane tiles,
    ragged-M slack, and an explicit double-buffered VMEM budget."""
    # dtype-native sublane tile: 8 (f32) / 16 (bf16) / 32 (int8/fp8)
    sub = max(8, 32 // max(1, x_bytes))
    # Ragged-M friendly: don't pad past ceil(M / tm_req) tiles worth of rows.
    n_row_tiles = max(1, _cdiv(M, tm_req))
    tm = _round_up(max(1, _cdiv(M, n_row_tiles)), sub)
    tk = _largest_tile(mid_p, tk_req)
    tn = _largest_tile(out_p, tn_req)

    def vmem_use(tm_, tk_, tn_):
        dbl = 2  # double-buffered pipeline
        return (dbl * (tm_ * in_p * x_bytes        # x tile
                       + in_p * tk_ * w_bytes      # W1 chunk
                       + tk_ * w_bytes             # b1 chunk
                       + tk_ * tn_ * w_bytes       # W2 chunk
                       + tn_ * w_bytes             # b2 chunk
                       + tm_ * tn_ * o_bytes)      # out tile
                + tm_ * tn_ * 4)                   # f32 accumulator

    # Shrink tk -> tn -> tm until the working set fits the budget.
    while vmem_use(tm, tk, tn) > budget_bytes:
        if tk > 256 and mid_p > 256:
            tk = _largest_tile(mid_p, max(256, tk // 2))
        elif tn > 512 and out_p > 512:
            tn = _largest_tile(out_p, max(512, tn // 2))
        elif tm > sub:
            tm = max(sub, _round_up(tm // 2, sub))
        else:
            break
    return tm, tk, tn


# --------------------------------------------------------------------------
# Kernel
# --------------------------------------------------------------------------
def _ffn_kernel(x_ref, w1_ref, b1_ref, w2_ref, b2_ref, o_ref, acc_ref):
    # x_ref : (tm, in_p)    w1_ref: (in_p, tk)   b1_ref: (1, tk)
    # w2_ref: (tk, tn)      b2_ref: (1, tn)
    # o_ref : (tm, tn)      acc_ref: (tm, tn) f32 scratch
    k = pl.program_id(2)

    @pl.when(k == 0)
    def _():
        # Fold b2 into the accumulator init -> no epilogue add pass.
        acc_ref[...] = jnp.broadcast_to(
            b2_ref[...].astype(jnp.float32), acc_ref.shape)

    # First layer chunk: native-dtype MXU matmul, f32 accumulation + ReLU.
    h = jnp.dot(x_ref[...], w1_ref[...], preferred_element_type=jnp.float32)
    h = jnp.maximum(h + b1_ref[...].astype(jnp.float32), 0.0)

    # Second layer chunk, accumulated over the hidden dimension.
    acc_ref[...] += jnp.dot(h.astype(w2_ref.dtype), w2_ref[...],
                            preferred_element_type=jnp.float32)

    @pl.when(k == pl.num_programs(2) - 1)
    def _():
        o_ref[...] = acc_ref[...].astype(o_ref.dtype)


# --------------------------------------------------------------------------
# Host-side wrappers
# --------------------------------------------------------------------------
def prepare_ffn_params(w1, b1, w2, b2, param_dtype=None):
    """Pad (and optionally cast, e.g. to bf16) the FFN weights ONCE, outside
    the jitted call, so per-call invocations never copy full weight matrices."""
    if param_dtype is not None:
        w1, b1, w2, b2 = (a.astype(param_dtype) for a in (w1, b1, w2, b2))
    in_dim, mid_dim = w1.shape
    out_dim = w2.shape[1]
    in_p = _round_up(in_dim, 128)
    mid_p = _round_up(mid_dim, 128)
    out_p = _round_up(out_dim, 128)
    w1p = jnp.pad(w1, ((0, in_p - in_dim), (0, mid_p - mid_dim)))
    b1p = jnp.pad(b1, (0, mid_p - mid_dim)).reshape(1, mid_p)
    w2p = jnp.pad(w2, ((0, mid_p - mid_dim), (0, out_p - out_dim)))
    b2p = jnp.pad(b2, (0, out_p - out_dim)).reshape(1, out_p)
    return (w1p, b1p, w2p, b2p), out_dim


@functools.partial(
    jax.jit,
    static_argnames=("out_dim", "tm", "tk", "tn", "vmem_limit_bytes"))
def _feed_forward_padded(x, w1p, b1p, w2p, b2p, *, out_dim, tm, tk, tn,
                         vmem_limit_bytes):
    in_dim = x.shape[-1]
    in_p, mid_p = w1p.shape
    out_p = w2p.shape[1]

    lead_shape = x.shape[:-1]
    x2d = x.reshape(-1, in_dim)
    M = x2d.shape[0]

    m_p = _round_up(M, tm)
    xp = x2d
    if m_p != M or in_p != in_dim:
        xp = jnp.pad(x2d, ((0, m_p - M), (0, in_p - in_dim)))

    grid = (m_p // tm, out_p // tn, mid_p // tk)

    out = pl.pallas_call(
        _ffn_kernel,
        out_shape=jax.ShapeDtypeStruct((m_p, out_p), x.dtype),
        grid_spec=pltpu.PrefetchScalarGridSpec(
            num_scalar_prefetch=0,
            grid=grid,
            in_specs=[
                pl.BlockSpec((tm, in_p), lambda i, j, k: (i, 0)),   # x rows
                pl.BlockSpec((in_p, tk), lambda i, j, k: (0, k)),   # W1 chunk
                pl.BlockSpec((1, tk), lambda i, j, k: (0, k)),      # b1 chunk
                pl.BlockSpec((tk, tn), lambda i, j, k: (k, j)),     # W2 chunk
                pl.BlockSpec((1, tn), lambda i, j, k: (0, j)),      # b2 chunk
            ],
            out_specs=pl.BlockSpec((tm, tn), lambda i, j, k: (i, j)),
            scratch_shapes=[pltpu.VMEM((tm, tn), jnp.float32)],
        ),
        compiler_params=pltpu.CompilerParams(
            dimension_semantics=("parallel", "parallel", "arbitrary"),
            vmem_limit_bytes=vmem_limit_bytes,
        ),
    )(xp, w1p, b1p, w2p, b2p)

    return out[:M, :out_dim].reshape(*lead_shape, out_dim)


def feed_forward_prepared(x, padded_params, out_dim, *, tm=512, tk=512,
                          tn=2048, vmem_limit_bytes=None):
    """Run the FFN with weights already padded by prepare_ffn_params."""
    w1p, b1p, w2p, b2p = padded_params
    if vmem_limit_bytes is None:
        vmem_limit_bytes = _device_vmem_limit()
    budget = max(16 * 1024 * 1024, vmem_limit_bytes - 8 * 1024 * 1024)

    M = 1
    for d in x.shape[:-1]:
        M *= int(d)
    in_p, mid_p = w1p.shape
    out_p = w2p.shape[1]

    tm_e, tk_e, tn_e = _pick_tiles(
        M, in_p, mid_p, out_p,
        x.dtype.itemsize, w1p.dtype.itemsize, x.dtype.itemsize,
        tm, tk, tn, budget)

    return _feed_forward_padded(x, w1p, b1p, w2p, b2p, out_dim=out_dim,
                                tm=tm_e, tk=tk_e, tn=tn_e,
                                vmem_limit_bytes=vmem_limit_bytes)


def feed_forward(x, w1, b1, w2, b2, *, tm=512, tk=512, tn=2048,
                 vmem_limit_bytes=None):
    """One-shot convenience: y = relu(x @ W1 + b1) @ W2 + b2.
    For repeated calls, pad once with prepare_ffn_params + feed_forward_prepared."""
    padded, out_dim = prepare_ffn_params(w1, b1, w2, b2)
    return feed_forward_prepared(x, padded, out_dim, tm=tm, tk=tk, tn=tn,
                                 vmem_limit_bytes=vmem_limit_bytes)


def feed_forward_ref(x, w1, b1, w2, b2):
    """Reference with the same mixed-precision contract as the kernel."""
    h = jnp.maximum(
        jnp.dot(x, w1, preferred_element_type=jnp.float32)
        + b1.astype(jnp.float32), 0.0)
    y = jnp.dot(h.astype(w2.dtype), w2, preferred_element_type=jnp.float32) \
        + b2.astype(jnp.float32)
    return y.astype(x.dtype)


# --------------------------------------------------------------------------
# Self-test
# --------------------------------------------------------------------------
def _make_params(key, in_dim, mid_dim, out_dim, dtype):
    k1, k2, k3, k4 = jax.random.split(key, 4)
    bound1 = 1.0 / (in_dim ** 0.5)
    bound2 = 1.0 / (mid_dim ** 0.5)
    w1 = jax.random.uniform(k1, (in_dim, mid_dim), jnp.float32, -bound1, bound1)
    b1 = jax.random.uniform(k2, (mid_dim,), jnp.float32, -bound1, bound1)
    w2 = jax.random.uniform(k3, (mid_dim, out_dim), jnp.float32, -bound2, bound2)
    b2 = jax.random.uniform(k4, (out_dim,), jnp.float32, -bound2, bound2)
    return (w1.astype(dtype), b1.astype(dtype),
            w2.astype(dtype), b2.astype(dtype))


if __name__ == "__main__":
    key = jax.random.PRNGKey(0)
    kx1, kp1, kx2, kp2 = jax.random.split(key, 4)

    # ---- primary small test (shapes consistent with the module), f32 -------
    batch, seq = 2, 8
    in_dim, mid_dim, out_dim = 32, 64, 32
    x = jax.random.normal(kx1, (batch, seq, in_dim), dtype=jnp.float32)
    w1, b1, w2, b2 = _make_params(kp1, in_dim, mid_dim, out_dim, jnp.float32)

    padded, od = prepare_ffn_params(w1, b1, w2, b2)      # pad weights once
    y = feed_forward_prepared(x, padded, od)
    jax.block_until_ready(y)
    y_ref = feed_forward_ref(x, w1, b1, w2, b2)
    assert y.shape == (batch, seq, out_dim)
    assert jnp.allclose(y, y_ref, atol=2e-5, rtol=2e-5), \
        float(jnp.max(jnp.abs(y - y_ref)))

    # ---- secondary test: bf16 weights, non-128-aligned dims, ragged rows ---
    batch2, seq2 = 2, 129
    in2, mid2, out2 = 96, 384, 160
    x2 = jax.random.normal(kx2, (batch2, seq2, in2), dtype=jnp.bfloat16)
    w1b, b1b, w2b, b2b = _make_params(kp2, in2, mid2, out2, jnp.bfloat16)

    padded2, od2 = prepare_ffn_params(w1b, b1b, w2b, b2b)
    y2 = feed_forward_prepared(x2, padded2, od2)
    jax.block_until_ready(y2)
    y2_ref = feed_forward_ref(x2, w1b, b1b, w2b, b2b)
    assert y2.shape == (batch2, seq2, out2)
    assert jnp.allclose(y2.astype(jnp.float32), y2_ref.astype(jnp.float32),
                        atol=2e-2, rtol=2e-2), \
        float(jnp.max(jnp.abs(y2.astype(jnp.float32)
                              - y2_ref.astype(jnp.float32))))

    print("KERNEL_OK")
</pallas_src>

<mosaic_0001>
module attributes {stable_mosaic.version = 11 : i64} {
  func.func @_ffn_kernel(%arg0: i32, %arg1: i32, %arg2: i32, %arg3: memref<16x128xf32, #tpu.memory_space<vmem>>, %arg4: memref<128x128xf32, #tpu.memory_space<vmem>>, %arg5: memref<1x128xf32, #tpu.memory_space<vmem>>, %arg6: memref<128x128xf32, #tpu.memory_space<vmem>>, %arg7: memref<1x128xf32, #tpu.memory_space<vmem>>, %arg8: memref<16x128xf32, #tpu.memory_space<vmem>>, %arg9: memref<16x128xf32, #tpu.memory_space<vmem>>) attributes {dimension_semantics = [#tpu.dimension_semantics<parallel>, #tpu.dimension_semantics<parallel>, #tpu.dimension_semantics<arbitrary>], iteration_bounds = array<i64: 1, 1, 1>, scalar_prefetch = 0 : i64, scratch_operands = 1 : i64, tpu.core_type = #tpu.core_type<tc>, window_params = [{transform_indices = @transform_0, window_bounds = array<i64: 16, 128>}, {transform_indices = @transform_1, window_bounds = array<i64: 128, 128>}, {transform_indices = @transform_2, window_bounds = array<i64: 1, 128>}, {transform_indices = @transform_3, window_bounds = array<i64: 128, 128>}, {transform_indices = @transform_4, window_bounds = array<i64: 1, 128>}, {transform_indices = @transform_5, window_bounds = array<i64: 16, 128>}]} {
    %c0_i32 = arith.constant 0 : i32
    %0 = arith.cmpi eq, %arg2, %c0_i32 : i32
    %1 = arith.extui %0 : i1 to i32
    %c0_i32_0 = arith.constant 0 : i32
    %2 = arith.cmpi ne, %1, %c0_i32_0 : i32
    scf.if %2 {
      %c0_16 = arith.constant 0 : index
      %c0_17 = arith.constant 0 : index
      %19 = vector.load %arg7[%c0_16, %c0_17] : memref<1x128xf32, #tpu.memory_space<vmem>>, vector<1x128xf32>
      %20 = vector.shape_cast %19 : vector<1x128xf32> to vector<1x128xf32>
      %21 = vector.broadcast %20 : vector<1x128xf32> to vector<16x128xf32>
      %c0_18 = arith.constant 0 : index
      %c0_19 = arith.constant 0 : index
      %22 = vector.load %arg9[%c0_18, %c0_19] : memref<16x128xf32, #tpu.memory_space<vmem>>, vector<16x128xf32>
      tpu.vector_store %arg9[%c0_18, %c0_19], %21 {strides = array<i32>} : memref<16x128xf32, #tpu.memory_space<vmem>>, vector<16x128xf32>,
    } else {
    }
    %c0 = arith.constant 0 : index
    %c0_1 = arith.constant 0 : index
    %3 = vector.load %arg3[%c0, %c0_1] : memref<16x128xf32, #tpu.memory_space<vmem>>, vector<16x128xf32>
    %c0_2 = arith.constant 0 : index
    %c0_3 = arith.constant 0 : index
    %4 = vector.load %arg4[%c0_2, %c0_3] : memref<128x128xf32, #tpu.memory_space<vmem>>, vector<128x128xf32>
    %cst = arith.constant dense<0.000000e+00> : vector<16x128xf32>
    %5 = tpu.matmul %3, %4, %cst {dimension_numbers = #tpu.dot_dimension_numbers<[1], [0], [0], [1], [0, 0, 1, 1], [], []>} : vector<16x128xf32>, vector<128x128xf32>, vector<16x128xf32> -> vector<16x128xf32>
    %c0_4 = arith.constant 0 : index
    %c0_5 = arith.constant 0 : index
    %6 = vector.load %arg5[%c0_4, %c0_5] : memref<1x128xf32, #tpu.memory_space<vmem>>, vector<1x128xf32>
    %7 = vector.broadcast %6 : vector<1x128xf32> to vector<16x128xf32>
    %8 = arith.addf %5, %7 : vector<16x128xf32>
    %cst_6 = arith.constant 0.000000e+00 : f32
    %9 = vector.broadcast %cst_6 : f32 to vector<16x128xf32>
    %10 = arith.maximumf %8, %9 : vector<16x128xf32>
    %c0_7 = arith.constant 0 : index
    %c0_8 = arith.constant 0 : index
    %11 = vector.load %arg9[%c0_7, %c0_8] : memref<16x128xf32, #tpu.memory_space<vmem>>, vector<16x128xf32>
    %c0_9 = arith.constant 0 : index
    %c0_10 = arith.constant 0 : index
    %12 = vector.load %arg6[%c0_9, %c0_10] : memref<128x128xf32, #tpu.memory_space<vmem>>, vector<128x128xf32>
    %cst_11 = arith.constant dense<0.000000e+00> : vector<16x128xf32>
    %13 = tpu.matmul %10, %12, %cst_11 {dimension_numbers = #tpu.dot_dimension_numbers<[1], [0], [0], [1], [0, 0, 1, 1], [], []>} : vector<16x128xf32>, vector<128x128xf32>, vector<16x128xf32> -> vector<16x128xf32>
    %14 = arith.addf %11, %13 : vector<16x128xf32>
    %c0_12 = arith.constant 0 : index
    %c0_13 = arith.constant 0 : index
    %15 = vector.load %arg9[%c0_12, %c0_13] : memref<16x128xf32, #tpu.memory_space<vmem>>, vector<16x128xf32>
    tpu.vector_store %arg9[%c0_12, %c0_13], %14 {strides = array<i32>} : memref<16x128xf32, #tpu.memory_space<vmem>>, vector<16x128xf32>,
    %c0_i32_14 = arith.constant 0 : i32
    %16 = arith.cmpi eq, %arg2, %c0_i32_14 : i32
    %17 = arith.extui %16 : i1 to i32
    %c0_i32_15 = arith.constant 0 : i32
    %18 = arith.cmpi ne, %17, %c0_i32_15 : i32
    scf.if %18 {
      %c0_16 = arith.constant 0 : index
      %c0_17 = arith.constant 0 : index
      %19 = vector.load %arg9[%c0_16, %c0_17] : memref<16x128xf32, #tpu.memory_space<vmem>>, vector<16x128xf32>
      %c0_18 = arith.constant 0 : index
      %c0_19 = arith.constant 0 : index
      %20 = vector.load %arg8[%c0_18, %c0_19] : memref<16x128xf32, #tpu.memory_space<vmem>>, vector<16x128xf32>
      tpu.vector_store %arg8[%c0_18, %c0_19], %19 {strides = array<i32>} : memref<16x128xf32, #tpu.memory_space<vmem>>, vector<16x128xf32>,
    } else {
    }
    return
  }
  func.func @transform_0(%arg0: i32, %arg1: i32, %arg2: i32) -> (i32, i32) {
    %c0_i32 = arith.constant 0 : i32
    %c0_i32_0 = arith.constant 0 : i32
    return %arg0, %c0_i32 : i32, i32
  }
  func.func @transform_1(%arg0: i32, %arg1: i32, %arg2: i32) -> (i32, i32) {
    %c0_i32 = arith.constant 0 : i32
    %c0_i32_0 = arith.constant 0 : i32
    return %c0_i32, %arg2 : i32, i32
  }
  func.func @transform_2(%arg0: i32, %arg1: i32, %arg2: i32) -> (i32, i32) {
    %c0_i32 = arith.constant 0 : i32
    %c0_i32_0 = arith.constant 0 : i32
    return %c0_i32, %arg2 : i32, i32
  }
  func.func @transform_3(%arg0: i32, %arg1: i32, %arg2: i32) -> (i32, i32) {
    %c0_i32 = arith.constant 0 : i32
    return %arg2, %arg1 : i32, i32
  }
  func.func @transform_4(%arg0: i32, %arg1: i32, %arg2: i32) -> (i32, i32) {
    %c0_i32 = arith.constant 0 : i32
    %c0_i32_0 = arith.constant 0 : i32
    return %c0_i32, %arg1 : i32, i32
  }
  func.func @transform_5(%arg0: i32, %arg1: i32, %arg2: i32) -> (i32, i32) {
    %c0_i32 = arith.constant 0 : i32
    return %arg0, %arg1 : i32, i32
  }
}

</mosaic_0001>

<bundles_post_ra>
// kernel: _feed_forward_padded.1
= control target key start
LH: loop header
LB: loop body
LE: loop exit
PB: predicated region body
PF: predicated region fallthrough
CT: control target
= control target key end

     0   :  { %10 = vsyncpa [#allocation4], 0  ;;  %s487_s0 = inlined_call_operand.vmem [shape: f32[16,128], index: 0, kind: input, shape index: {}]   ;;  %s488_s1 = inlined_call_operand.hbm [shape: f32[128,128], index: 1, kind: input, shape index: {}]   ;;  %s489_s2 = inlined_call_operand.vmem [shape: f32[1,128], index: 2, kind: input, shape index: {}]   ;;  %s490_s3 = inlined_call_operand.hbm [shape: f32[128,128], index: 3, kind: input, shape index: {}]   ;;  %s491_s4 = inlined_call_operand.vmem [shape: f32[1,128], index: 4, kind: input, shape index: {}]   ;;  %s492_s5 = inlined_call_operand.vmem [shape: f32[16,128], index: 5, kind: output, shape index: {}]  }
   0x1   :  { %11 = vsyncpa [#allocation6], 0  ;;  %s429_s18 = smov [#allocation3]  }
   0x2   :  { %s19_s19 = sshll.u32 %s429_s18, 4  ;;  %s20_s19 = int_to_ptr.vmem [resolvable:$true] %s19_s19 }
   0x3   :  { %s393_s20 = scalar_lea.vmem %s20_s19, 2048  ;;  %p398_p1 = scmp.lt.s32.totalorder %s20_s19, %s20_s19 }
   0x4   :  { %p394_p0 = scmp.ne.s32.totalorder %s20_s19, %s393_s20  ;;  %p399_p2 = scmp.lt.s32.totalorder %s393_s20, %s393_s20 }
   0x6   :  { %p400_p3 = por %p399_p2, %p398_p1 }
   0x8   :  { %p401_p4 = pnand %p400_p3, %p394_p0 }
   0xa   :  { %404 = shalt.err (!%p401_p4)
}
   0xb   :  { %s430_s21 = smov 128   ;;  %s431_s22 = smov 8  }
   0xc   :  { %25 = dma.hbm_to_vmem [thread:$0]  %s488_s1, 2048, %s20_s19, [#allocation4], %s430_s21, %s430_s21, %s431_s22  }
   0xd   :  { %s432_s25 = smov [#allocation5]  }
   0xe   :  { %s33_s26 = sshll.u32 %s432_s25, 4  ;;  %s34_s26 = int_to_ptr.vmem [resolvable:$true] %s33_s26 }
   0xf   :  { %s413_s27 = scalar_lea.vmem %s34_s26, 2048  ;;  %p418_p6 = scmp.lt.s32.totalorder %s34_s26, %s34_s26 }
  0x10   :  { %p414_p5 = scmp.ne.s32.totalorder %s34_s26, %s413_s27  ;;  %p419_p7 = scmp.lt.s32.totalorder %s413_s27, %s413_s27 }
  0x12   :  { %p420_p8 = por %p419_p7, %p418_p6 }
  0x14   :  { %p421_p9 = pnand %p420_p8, %p414_p5 }
  0x16   :  { %424 = shalt.err (!%p421_p9)
}
  0x17   :  { %39 = dma.hbm_to_vmem [thread:$0]  %s490_s3, 2048, %s34_s26, [#allocation6], %s430_s21, %s430_s21, %s431_s22  }
  0x18   :  { %425 = dma.done.wait [#allocation4], 2048  }
  0x19   :  { %426 = vsyncadd [#allocation4], 4294965248 }
  0x1a   :  { %427 = dma.done.wait [#allocation6], 2048  }
  0x1b   :  { %428 = vsyncadd [#allocation6], 4294965248  ;;  %v78_v0 = vld [vmem:[#allocation3 + $0x78] sm:$0xff]  ;;  %v77_v1 = vld [vmem:[#allocation3 + $0x70] sm:$0xff] }
  0x1c   :  { %311 = vmatprep.subr.mxu0 %v78_v0  ;;  %v76_v2 = vld [vmem:[#allocation3 + $0x68] sm:$0xff]  ;;  %v75_v3 = vld [vmem:[#allocation3 + $0x60] sm:$0xff]  ;;  %v74_v5 = vld [vmem:[#allocation3 + $0x58] sm:$0xff] }
  0x1d   :  { %312 = vmatpush3.msra.mxu0 %v78_v0  ;;  %v61_v4 = vld [vmem:[%s487_s0] sm:$0xff]  ;;  %v180_v6 = vld [vmem:[#allocation5 + $0x78] sm:$0xff]  ;;  %v179_v7 = vld [vmem:[#allocation5 + $0x70] sm:$0xff] }
  0x1e   :  { %313 = vmatprep.subr.mxu0 %v77_v1  ;;  %343 = vmatprep.mubr.f32.mxu0 %v61_v4  ;;  %v73_v8 = vld [vmem:[#allocation3 + $0x50] sm:$0xff]  ;;  %v178_v9 = vld [vmem:[#allocation5 + $0x68] sm:$0xff]  ;;  %v177_v11 = vld [vmem:[#allocation5 + $0x60] sm:$0xff] }
  0x1f   :  { %314 = vmatpush3.msra.mxu0 %v77_v1  ;;  %346 = vmatprep.subr.mxu1 %v180_v6  ;;  %v72_v10 = vld [vmem:[#allocation3 + $0x48] sm:$0xff]  ;;  %v71_v12 = vld [vmem:[#allocation3 + $0x40] sm:$0xff]  ;;  %v176_v13 = vld [vmem:[#allocation5 + $0x58] sm:$0xff] }
  0x20   :  { %315 = vmatprep.subr.mxu0 %v76_v2  ;;  %347 = vmatpush3.msra.mxu1 %v180_v6  ;;  %v70_v14 = vld [vmem:[#allocation3 + $0x38] sm:$0xff]  ;;  %v175_v15 = vld [vmem:[#allocation5 + $0x50] sm:$0xff]  ;;  %v174_v17 = vld [vmem:[#allocation5 + $0x48] sm:$0xff] }
  0x21   :  { %316 = vmatpush3.msra.mxu0 %v76_v2  ;;  %348 = vmatprep.subr.mxu1 %v179_v7  ;;  %v69_v16 = vld [vmem:[#allocation3 + $0x30] sm:$0xff]  ;;  %v68_v18 = vld [vmem:[#allocation3 + $0x28] sm:$0xff]  ;;  %v173_v19 = vld [vmem:[#allocation5 + $0x40] sm:$0xff] }
  0x22   :  { %317 = vmatprep.subr.mxu0 %v75_v3  ;;  %349 = vmatpush3.msra.mxu1 %v179_v7  ;;  %v67_v20 = vld [vmem:[#allocation3 + $0x20] sm:$0xff]  ;;  %v172_v21 = vld [vmem:[#allocation5 + $0x38] sm:$0xff]  ;;  %v171_v23 = vld [vmem:[#allocation5 + $0x30] sm:$0xff] }
  0x23   :  { %318 = vmatpush3.msra.mxu0 %v75_v3  ;;  %350 = vmatprep.subr.mxu1 %v178_v9  ;;  %v66_v22 = vld [vmem:[#allocation3 + $0x18] sm:$0xff]  ;;  %v65_v24 = vld [vmem:[#allocation3 + $0x10] sm:$0xff]  ;;  %v170_v25 = vld [vmem:[#allocation5 + $0x28] sm:$0xff] }
  0x24   :  { %319 = vmatprep.subr.mxu0 %v74_v5  ;;  %351 = vmatpush3.msra.mxu1 %v178_v9  ;;  %v64_v26 = vld [vmem:[#allocation3 + $0x8] sm:$0xff]  ;;  %v169_v27 = vld [vmem:[#allocation5 + $0x20] sm:$0xff]  ;;  %v168_v30 = vld [vmem:[#allocation5 + $0x18] sm:$0xff] }
  0x25   :  { %320 = vmatpush3.msra.mxu0 %v74_v5  ;;  %352 = vmatprep.subr.mxu1 %v177_v11  ;;  %v63_v28 = vld [vmem:[#allocation3] sm:$0xff]  ;;  %v62_v29 = vld [vmem:[%s487_s0 + $0x8] sm:$0xff]  ;;  %v167_v31 = vld [vmem:[#allocation5 + $0x10] sm:$0xff] }
  0x26   :  { %321 = vmatprep.subr.mxu0 %v73_v8  ;;  %353 = vmatpush3.msra.mxu1 %v177_v11  ;;  %v166_v32 = vld [vmem:[#allocation5 + $0x8] sm:$0xff]  ;;  %v165_v33 = vld [vmem:[#allocation5] sm:$0xff] }
  0x27   :  { %322 = vmatpush3.msra.mxu0 %v73_v8  ;;  %354 = vmatprep.subr.mxu1 %v176_v13  ;;  %v274_v34 = vld [vmem:[%s489_s2] ss:$0 sm:$0xff] }
  0x28   :  { %323 = vmatprep.subr.mxu0 %v72_v10  ;;  %355 = vmatpush3.msra.mxu1 %v176_v13  ;;  %v273_v41 = vld [vmem:[%s491_s4] ss:$0 sm:$0xff] }
  0x29   :  { %324 = vmatpush3.msra.mxu0 %v72_v10  ;;  %356 = vmatprep.subr.mxu1 %v175_v15 }
  0x2a   :  { %325 = vmatprep.subr.mxu0 %v71_v12  ;;  %357 = vmatpush3.msra.mxu1 %v175_v15 }
  0x2b   :  { %326 = vmatpush3.msra.mxu0 %v71_v12  ;;  %358 = vmatprep.subr.mxu1 %v174_v17 }
  0x2c   :  { %327 = vmatprep.subr.mxu0 %v70_v14  ;;  %359 = vmatpush3.msra.mxu1 %v174_v17 }
  0x2d   :  { %328 = vmatpush3.msra.mxu0 %v70_v14  ;;  %360 = vmatprep.subr.mxu1 %v173_v19 }
  0x2e   :  { %329 = vmatprep.subr.mxu0 %v69_v16  ;;  %361 = vmatpush3.msra.mxu1 %v173_v19 }
  0x2f   :  { %330 = vmatpush3.msra.mxu0 %v69_v16  ;;  %362 = vmatprep.subr.mxu1 %v172_v21 }
  0x30   :  { %331 = vmatprep.subr.mxu0 %v68_v18  ;;  %363 = vmatpush3.msra.mxu1 %v172_v21 }
  0x31   :  { %332 = vmatpush3.msra.mxu0 %v68_v18  ;;  %364 = vmatprep.subr.mxu1 %v171_v23 }
  0x32   :  { %333 = vmatprep.subr.mxu0 %v67_v20  ;;  %365 = vmatpush3.msra.mxu1 %v171_v23 }
  0x33   :  { %334 = vmatpush3.msra.mxu0 %v67_v20  ;;  %366 = vmatprep.subr.mxu1 %v170_v25 }
  0x34   :  { %335 = vmatprep.subr.mxu0 %v66_v22  ;;  %367 = vmatpush3.msra.mxu1 %v170_v25 }
  0x35   :  { %336 = vmatpush3.msra.mxu0 %v66_v22  ;;  %368 = vmatprep.subr.mxu1 %v169_v27 }
  0x36   :  { %337 = vmatprep.subr.mxu0 %v65_v24  ;;  %369 = vmatpush3.msra.mxu1 %v169_v27 }
  0x37   :  { %338 = vmatpush3.msra.mxu0 %v65_v24  ;;  %370 = vmatprep.subr.mxu1 %v168_v30 }
  0x38   :  { %339 = vmatprep.subr.mxu0 %v64_v26  ;;  %371 = vmatpush3.msra.mxu1 %v168_v30 }
  0x39   :  { %340 = vmatpush3.msra.mxu0 %v64_v26  ;;  %372 = vmatprep.subr.mxu1 %v167_v31 }
  0x3a   :  { %341 = vmatprep.subr.mxu0 %v63_v28  ;;  %373 = vmatpush3.msra.mxu1 %v167_v31 }
  0x3b   :  { %342 = vmatpush3.msra.mxu0 %v63_v28  ;;  %374 = vmatprep.subr.mxu1 %v166_v32 }
  0x3c   :  { %344 = vmatmul.mubr.f32.vlgmr.msra.gmra.mxu0 %v62_v29  ;;  %375 = vmatpush3.msra.mxu1 %v166_v32 }
  0x3d   :  { %376 = vmatprep.subr.mxu1 %v165_v33 }
  0x3e   :  { %377 = vmatpush3.msra.mxu1 %v165_v33 }
  0xfc   :  { %v345_v35 = vpop.f32.mrf.mxu0 }
  0xfd   :  { %v158_v36 = vadd.f32 %v345_v35, %v274_v34 }
  0xfe   :  { %v152_v37 = vpop.f32.mrf.mxu0 }
  0xff   :  { %v153_v38 = vadd.f32 %v274_v34, %v152_v37  ;;  %v162_v40 = vmax.f32 %v158_v36, 0.0 }
 0x101   :  { %v161_v39 = vmax.f32 %v153_v38, 0.0 }
 0x103   :  { %378 = vmatprep.mubr.f32.mxu1 %v161_v39 }
 0x104   :  { %379 = vmatmul.mubr.f32.vlgmr.msra.gmra.mxu1 %v162_v40 }
 0x1c4   :  { %v380_v42 = vpop.f32.mrf.mxu1 }
 0x1c5   :  { %v257_v43 = vadd.f32 %v380_v42, %v273_v41 }
 0x1c6   :  { %v247_v44 = vpop.f32.mrf.mxu1 }
 0x1c7   :  { %266 = vst [vmem:[%s492_s5 + $0x8] sm:$0xff] %v257_v43  ;;  %v256_v45 = vadd.f32 %v273_v41, %v247_v44 }
 0x1c9   :  { %265 = vst [vmem:[%s492_s5] sm:$0xff] %v256_v45 }
 0x1ca   :  { %271 = vsyncpa [#allocation4], 1 }
 0x1cb   :  { %272 = vsyncpa [#allocation6], 1 }

</bundles_post_ra>
